<compile_context>
chip_gen: v7x
topology: tpu7x:2x2x1
jax: 0.10.0
libtpu: 0.0.40
codegen_flags: <defaults>
</compile_context>

<pallas_src>
import math

import jax
import jax.numpy as jnp
from jax.experimental import pallas as pl
from jax.experimental.pallas import tpu as pltpu


def _dma_copy_kernel(x_hbm, o_hbm, sem):
    # One contiguous HBM -> HBM DMA of the whole flattened slab.
    cp = pltpu.make_async_copy(x_hbm, o_hbm, sem)
    cp.start()
    cp.wait()


def flatten_view(x):
    """Zero-traffic flatten: free metadata reshape (matches torch.flatten
    row-major order).  Use this on the hot path whenever a view suffices."""
    n = x.shape[0]
    d = math.prod(x.shape[1:]) if x.ndim > 1 else 1
    return jnp.reshape(x, (n, d))


def flatten_pallas(x):
    """Flatten all dims except the leading (batch) dim, producing a fresh
    materialized (N, D) buffer via a single HBM->HBM DMA Pallas kernel."""
    x2 = flatten_view(x)
    n, d = x2.shape
    if n == 0 or d == 0:
        return x2

    itemsize = jnp.dtype(x2.dtype).itemsize

    return pl.pallas_call(
        _dma_copy_kernel,
        out_shape=jax.ShapeDtypeStruct((n, d), x2.dtype),
        in_specs=[pl.BlockSpec(memory_space=pl.ANY)],
        out_specs=pl.BlockSpec(memory_space=pl.ANY),
        scratch_shapes=[pltpu.SemaphoreType.DMA],
        compiler_params=pltpu.CompilerParams(has_side_effects=True),
        cost_estimate=pl.CostEstimate(
            flops=0,
            transcendentals=0,
            bytes_accessed=2 * n * d * itemsize,
        ),
    )(x2)


class FlattenPallas:
    """Mirror of the PyTorch Flatten module.

    `fc` is nn.Identity unless num_classes is set, and is never used in
    forward(), so no parameters are created here.
    """

    def __init__(self, n_pixels, n_channels, num_classes=None):
        self.embed_dim = n_pixels * n_channels
        # TODO(synk): `self.fc` (nn.Linear) exists in the PyTorch __init__ but
        # is never applied in forward(), so it is intentionally omitted here.

    def __call__(self, x):
        # Materialized flatten via the single-DMA Pallas kernel.  Callers that
        # only need a view should call flatten_view(x) (zero HBM traffic).
        return flatten_pallas(x)


if __name__ == "__main__":
    key = jax.random.PRNGKey(0)
    N, C, H, W = 2, 4, 16, 16  # NCHW, matching PyTorch conv-style input
    x = jax.random.normal(key, (N, C, H, W), dtype=jnp.float32)

    model = FlattenPallas(n_pixels=H * W, n_channels=C)
    out = model(x)
    out = jax.block_until_ready(out)

    ref = jnp.reshape(x, (N, C * H * W))
    assert out.shape == (N, C * H * W), out.shape
    assert out.dtype == x.dtype
    assert jnp.array_equal(out, ref), "mismatch vs reference flatten"

    # Zero-copy path must match as well.
    view = jax.block_until_ready(flatten_view(x))
    assert jnp.array_equal(view, ref)

    print("KERNEL_OK")
</pallas_src>

<mosaic_0001>
module attributes {stable_mosaic.version = 11 : i64} {
  func.func @_dma_copy_kernel(%arg0: memref<2x1024xf32, #tpu.memory_space<any>>, %arg1: memref<2x1024xf32, #tpu.memory_space<any>>, %arg2: memref<!tpu.dma_semaphore, #tpu.memory_space<semaphore_mem>>) attributes {dimension_semantics = [], scalar_prefetch = 0 : i64, scratch_operands = 1 : i64, tpu.core_type = #tpu.core_type<tc>} {
    tpu.enqueue_dma source(%arg0 : memref<2x1024xf32, #tpu.memory_space<any>>) target(%arg1 : memref<2x1024xf32, #tpu.memory_space<any>>) target_semaphore(%arg2 : memref<!tpu.dma_semaphore, #tpu.memory_space<semaphore_mem>>)
    tpu.wait_dma2 semaphore(%arg2 : memref<!tpu.dma_semaphore, #tpu.memory_space<semaphore_mem>>) src(%arg0 : memref<2x1024xf32, #tpu.memory_space<any>>) dst(%arg1 : memref<2x1024xf32, #tpu.memory_space<any>>)
    return
  }
}

</mosaic_0001>

<bundles_post_ra>
// kernel: tpu_custom_call.1
= control target key start
LH: loop header
LB: loop body
LE: loop exit
PB: predicated region body
PF: predicated region fallthrough
CT: control target
= control target key end

     0   :  { %s35_s6 = smov [#allocation2]   ;;  %s36_s7 = smov [#allocation3]   ;;  %s54_s0 = inlined_call_operand.hbm [shape: f32[2,1024], index: 0, kind: input, shape index: {}]   ;;  %s55_s1 = inlined_call_operand.hbm [shape: f32[2,1024], index: 1, kind: output, shape index: {}]  }
   0x1   :  { %s37_s8 = smov 0  }
   0x2   :  { %18 = dma.general %s54_s0, 256, %s55_s1, %s35_s6, %s36_s7, [#allocation4], %s37_s8, 0  }
   0x3   :  { %33 = dma.done.wait [#allocation2], 256 }
   0x4   :  { %34 = vsyncadd [#allocation2], 4294967040 }
   0x5   :  { %23 = vsyncmov [#allocation2] }
   0x8   :  { %s24_s13 = vpop.sfrf %23 }
   0x9   :  { %p29_p0 = scmp.ne.s32.totalorder %s24_s13, 0 }
   0xb   :  { %28 = shalt.err (%p29_p0)  }

</bundles_post_ra>
